<compile_context>
chip_gen: v5e
topology: v5e:2x2
jax: 0.10.0
libtpu: 0.0.40
codegen_flags: <defaults>
</compile_context>

<pallas_src>
import functools

import jax
import jax.numpy as jnp
from jax.experimental import pallas as pl
from jax.experimental.pallas import tpu as pltpu


def find_multiple(n: int, k: int) -> int:
    if n % k == 0:
        return n
    return n + k - n % k


def _round_up(n: int, k: int) -> int:
    return ((n + k - 1) // k) * k


def _llama_mlp_kernel(x_ref, w12_ref, w3_ref, o_ref, acc_ref, *, th: int):
    # x_ref:   (tm, Kp)        compute-dtype activation tile (constant over h)
    # w12_ref: (1, Kp, 2*th)   packed [W1^T | W2^T] hidden tile
    # w3_ref:  (th, Kp)        W3^T hidden tile
    # o_ref:   (tm, Kp)        output tile (written on last hidden step)
    # acc_ref: (tm, Kp) f32    accumulator scratch
    h = pl.program_id(1)

    @pl.when(h == 0)
    def _init():
        acc_ref[...] = jnp.zeros_like(acc_ref)

    x = x_ref[...]
    w12 = w12_ref[0]                                    # (Kp, 2*th)

    # Single fused MXU matmul for both gate projections, f32 accumulation.
    h12 = jnp.dot(x, w12, preferred_element_type=jnp.float32)   # (tm, 2*th)
    h1 = h12[:, :th]
    h2 = h12[:, th:]

    # SwiGLU gate in f32 (VPU mul + EUP sigmoid; hidden under the MXU).
    gated = (h1 * jax.nn.sigmoid(h1)) * h2

    acc_ref[...] += jnp.dot(gated.astype(w3_ref.dtype), w3_ref[...],
                            preferred_element_type=jnp.float32)

    @pl.when(h == pl.num_programs(1) - 1)
    def _finalize():
        o_ref[...] = acc_ref[...].astype(o_ref.dtype)


def llama_mlp_pallas(x, w1, w2, w3, *, tm=None, th=None,
                     compute_dtype=jnp.bfloat16):
    """x: (B, S, n_embd); w1, w2: (n_hidden, n_embd); w3: (n_embd, n_hidden)
    (PyTorch nn.Linear (out, in) layout).  Returns (B, S, n_embd) in x.dtype."""
    B, S, n_embd = x.shape
    n_hidden, n_embd_w = w1.shape
    assert n_embd_w == n_embd and w2.shape == w1.shape
    assert w3.shape == (n_embd, n_hidden)

    M = B * S
    out_dtype = x.dtype
    if compute_dtype is None:
        compute_dtype = x.dtype

    # Tile selection: 256-row tiles feed the 256-wide MXU (v6e/v7x); small M
    # just rounds up to the sublane multiple.  Hidden streamed in 512 chunks.
    if tm is None:
        tm = 256 if M >= 256 else _round_up(M, 8)
    if th is None:
        th = 512 if n_hidden >= 512 else _round_up(n_hidden, 128)

    Mp = _round_up(M, tm)
    Hp = _round_up(n_hidden, th)
    Kp = _round_up(n_embd, 128)

    # Flatten + pad activations (zero padding is mathematically inert here).
    x2 = x.reshape(M, n_embd).astype(compute_dtype)
    x2 = jnp.pad(x2, ((0, Mp - M), (0, Kp - n_embd)))

    # Transpose PyTorch (out,in) weights to (in,out), cast, pad.
    w1t = jnp.pad(w1.T.astype(compute_dtype),
                  ((0, Kp - n_embd), (0, Hp - n_hidden)))
    w2t = jnp.pad(w2.T.astype(compute_dtype),
                  ((0, Kp - n_embd), (0, Hp - n_hidden)))
    w3t = jnp.pad(w3.T.astype(compute_dtype),
                  ((0, Hp - n_hidden), (0, Kp - n_embd)))

    n_h_tiles = Hp // th
    # Pack per-hidden-tile [W1 | W2] slabs: (n_h_tiles, Kp, 2*th)
    w1r = w1t.reshape(Kp, n_h_tiles, th)
    w2r = w2t.reshape(Kp, n_h_tiles, th)
    w12 = jnp.transpose(jnp.concatenate([w1r, w2r], axis=-1), (1, 0, 2))

    grid = (Mp // tm, n_h_tiles)

    # Explicit scoped-VMEM budget for the chosen tiles (double-buffered
    # inputs/outputs + f32 accumulator + f32 intermediates), with margin.
    cbytes = jnp.dtype(compute_dtype).itemsize
    obytes = jnp.dtype(out_dtype).itemsize
    vmem_needed = (
        2 * (tm * Kp * cbytes            # x tile
             + Kp * 2 * th * cbytes      # packed W1|W2 tile
             + th * Kp * cbytes          # W3 tile
             + tm * Kp * obytes)         # output tile
        + tm * Kp * 4                    # f32 accumulator scratch
        + 3 * tm * (2 * th) * 4          # f32 h12 / gate temporaries
    )
    vmem_limit = min(max(int(vmem_needed * 1.3) + (2 << 20), 16 << 20), 96 << 20)

    kernel = functools.partial(_llama_mlp_kernel, th=th)

    out2 = pl.pallas_call(
        kernel,
        out_shape=jax.ShapeDtypeStruct((Mp, Kp), out_dtype),
        grid_spec=pltpu.PrefetchScalarGridSpec(
            num_scalar_prefetch=0,
            grid=grid,
            in_specs=[
                pl.BlockSpec((tm, Kp), lambda i, h: (i, 0)),          # x tile
                pl.BlockSpec((1, Kp, 2 * th), lambda i, h: (h, 0, 0)),  # W1|W2
                pl.BlockSpec((th, Kp), lambda i, h: (h, 0)),          # W3^T
            ],
            out_specs=pl.BlockSpec((tm, Kp), lambda i, h: (i, 0)),
            scratch_shapes=[pltpu.VMEM((tm, Kp), jnp.float32)],
        ),
        compiler_params=pltpu.CompilerParams(
            dimension_semantics=("parallel", "arbitrary"),
            vmem_limit_bytes=vmem_limit,
        ),
    )(x2, w12, w3t)

    return out2[:M, :n_embd].reshape(B, S, n_embd)


def llama_mlp_reference_f32(x, w1, w2, w3):
    h1 = jnp.einsum("bsd,hd->bsh", x, w1)
    h2 = jnp.einsum("bsd,hd->bsh", x, w2)
    g = jax.nn.silu(h1) * h2
    return jnp.einsum("bsh,dh->bsd", g, w3)


def llama_mlp_reference_matched(x, w1, w2, w3, compute_dtype=jnp.bfloat16):
    """Precision-matched reference: bf16 operands, f32 accumulation."""
    xc = x.astype(compute_dtype)
    w1c, w2c, w3c = (w.astype(compute_dtype) for w in (w1, w2, w3))
    h1 = jnp.einsum("bsd,hd->bsh", xc, w1c, preferred_element_type=jnp.float32)
    h2 = jnp.einsum("bsd,hd->bsh", xc, w2c, preferred_element_type=jnp.float32)
    g = (h1 * jax.nn.sigmoid(h1)) * h2
    out = jnp.einsum("bsh,dh->bsd", g.astype(compute_dtype), w3c,
                     preferred_element_type=jnp.float32)
    return out.astype(x.dtype)


if __name__ == "__main__":
    # Module hyper-params: n_embd -> n_hidden = find_multiple(2*4*n_embd/3, 256)
    n_embd = 128
    hidden_dim = 4 * n_embd
    n_hidden = find_multiple(int(2 * hidden_dim / 3), 256)   # 341 -> 512

    B, S = 2, 8   # small demo shapes; M = 16 rows

    key = jax.random.PRNGKey(0)
    kx, k1, k2, k3 = jax.random.split(key, 4)

    x = jax.random.normal(kx, (B, S, n_embd), dtype=jnp.float32)
    # PyTorch nn.Linear weight layout: (out_features, in_features).
    w1 = jax.random.normal(k1, (n_hidden, n_embd), dtype=jnp.float32) * 0.02
    w2 = jax.random.normal(k2, (n_hidden, n_embd), dtype=jnp.float32) * 0.02
    w3 = jax.random.normal(k3, (n_embd, n_hidden), dtype=jnp.float32) * 0.02

    out = llama_mlp_pallas(x, w1, w2, w3)
    out = jax.block_until_ready(out)
    assert out.shape == (B, S, n_embd)

    # Precision-matched reference (same bf16-operand / f32-accumulate recipe).
    ref_m = llama_mlp_reference_matched(x, w1, w2, w3)
    assert jnp.allclose(out, ref_m, atol=2e-3, rtol=2e-3), \
        "mismatch vs precision-matched reference"

    # Sanity vs pure-f32 reference (looser tolerance for bf16 operands).
    ref_f32 = llama_mlp_reference_f32(x, w1, w2, w3)
    assert jnp.allclose(out, ref_f32, atol=1e-2, rtol=1e-2), \
        "mismatch vs f32 reference"

    print("KERNEL_OK")
</pallas_src>

<mosaic_0001>
module attributes {stable_mosaic.version = 11 : i64} {
  func.func @_llama_mlp_kernel(%arg0: i32, %arg1: i32, %arg2: memref<16x128xbf16, #tpu.memory_space<vmem>>, %arg3: memref<1x128x1024xbf16, #tpu.memory_space<vmem>>, %arg4: memref<512x128xbf16, #tpu.memory_space<vmem>>, %arg5: memref<16x128xf32, #tpu.memory_space<vmem>>, %arg6: memref<16x128xf32, #tpu.memory_space<vmem>>) attributes {dimension_semantics = [#tpu.dimension_semantics<parallel>, #tpu.dimension_semantics<arbitrary>], iteration_bounds = array<i64: 1, 1>, scalar_prefetch = 0 : i64, scratch_operands = 1 : i64, tpu.core_type = #tpu.core_type<tc>, window_params = [{transform_indices = @transform_0, window_bounds = array<i64: 16, 128>}, {transform_indices = @transform_1, window_bounds = array<i64: 1, 128, 1024>}, {transform_indices = @transform_2, window_bounds = array<i64: 512, 128>}, {transform_indices = @transform_3, window_bounds = array<i64: 16, 128>}]} {
    %c0_i32 = arith.constant 0 : i32
    %0 = arith.cmpi eq, %arg1, %c0_i32 : i32
    %1 = arith.extui %0 : i1 to i32
    %c0_i32_0 = arith.constant 0 : i32
    %2 = arith.cmpi ne, %1, %c0_i32_0 : i32
    scf.if %2 {
      %cst_15 = arith.constant 0.000000e+00 : f32
      %25 = vector.broadcast %cst_15 : f32 to vector<16x128xf32>
      %c0_16 = arith.constant 0 : index
      %c0_17 = arith.constant 0 : index
      %26 = vector.load %arg6[%c0_16, %c0_17] : memref<16x128xf32, #tpu.memory_space<vmem>>, vector<16x128xf32>
      tpu.vector_store %arg6[%c0_16, %c0_17], %25 {strides = array<i32>} : memref<16x128xf32, #tpu.memory_space<vmem>>, vector<16x128xf32>,
    } else {
    }
    %c0 = arith.constant 0 : index
    %c0_1 = arith.constant 0 : index
    %3 = vector.load %arg2[%c0, %c0_1] : memref<16x128xbf16, #tpu.memory_space<vmem>>, vector<16x128xbf16>
    %c0_2 = arith.constant 0 : index
    %c0_3 = arith.constant 0 : index
    %c0_4 = arith.constant 0 : index
    %4 = vector.load %arg3[%c0_2, %c0_3, %c0_4] : memref<1x128x1024xbf16, #tpu.memory_space<vmem>>, vector<1x128x1024xbf16>
    %5 = vector.shape_cast %4 : vector<1x128x1024xbf16> to vector<128x1024xbf16>
    %cst = arith.constant dense<0.000000e+00> : vector<16x1024xf32>
    %6 = tpu.matmul %3, %5, %cst {dimension_numbers = #tpu.dot_dimension_numbers<[1], [0], [0], [1], [0, 0, 1, 1], [], []>} : vector<16x128xbf16>, vector<128x1024xbf16>, vector<16x1024xf32> -> vector<16x1024xf32>
    %7 = vector.extract_strided_slice %6 {offsets = [0, 0], sizes = [16, 512], strides = [1, 1]} : vector<16x1024xf32> to vector<16x512xf32>
    %8 = vector.extract_strided_slice %6 {offsets = [0, 512], sizes = [16, 512], strides = [1, 1]} : vector<16x1024xf32> to vector<16x512xf32>
    %9 = arith.negf %7 : vector<16x512xf32>
    %10 = math.exp %9 : vector<16x512xf32>
    %cst_5 = arith.constant 1.000000e+00 : f32
    %11 = vector.broadcast %cst_5 : f32 to vector<16x512xf32>
    %12 = arith.addf %11, %10 : vector<16x512xf32>
    %13 = arith.divf %11, %12 : vector<16x512xf32>
    %14 = arith.mulf %7, %13 : vector<16x512xf32>
    %15 = arith.mulf %14, %8 : vector<16x512xf32>
    %c0_6 = arith.constant 0 : index
    %c0_7 = arith.constant 0 : index
    %16 = vector.load %arg6[%c0_6, %c0_7] : memref<16x128xf32, #tpu.memory_space<vmem>>, vector<16x128xf32>
    %17 = arith.truncf %15 : vector<16x512xf32> to vector<16x512xbf16>
    %c0_8 = arith.constant 0 : index
    %c0_9 = arith.constant 0 : index
    %18 = vector.load %arg4[%c0_8, %c0_9] : memref<512x128xbf16, #tpu.memory_space<vmem>>, vector<512x128xbf16>
    %cst_10 = arith.constant dense<0.000000e+00> : vector<16x128xf32>
    %19 = tpu.matmul %17, %18, %cst_10 {dimension_numbers = #tpu.dot_dimension_numbers<[1], [0], [0], [1], [0, 0, 1, 1], [], []>} : vector<16x512xbf16>, vector<512x128xbf16>, vector<16x128xf32> -> vector<16x128xf32>
    %20 = arith.addf %16, %19 : vector<16x128xf32>
    %c0_11 = arith.constant 0 : index
    %c0_12 = arith.constant 0 : index
    %21 = vector.load %arg6[%c0_11, %c0_12] : memref<16x128xf32, #tpu.memory_space<vmem>>, vector<16x128xf32>
    tpu.vector_store %arg6[%c0_11, %c0_12], %20 {strides = array<i32>} : memref<16x128xf32, #tpu.memory_space<vmem>>, vector<16x128xf32>,
    %c0_i32_13 = arith.constant 0 : i32
    %22 = arith.cmpi eq, %arg1, %c0_i32_13 : i32
    %23 = arith.extui %22 : i1 to i32
    %c0_i32_14 = arith.constant 0 : i32
    %24 = arith.cmpi ne, %23, %c0_i32_14 : i32
    scf.if %24 {
      %c0_15 = arith.constant 0 : index
      %c0_16 = arith.constant 0 : index
      %25 = vector.load %arg6[%c0_15, %c0_16] : memref<16x128xf32, #tpu.memory_space<vmem>>, vector<16x128xf32>
      %c0_17 = arith.constant 0 : index
      %c0_18 = arith.constant 0 : index
      %26 = vector.load %arg5[%c0_17, %c0_18] : memref<16x128xf32, #tpu.memory_space<vmem>>, vector<16x128xf32>
      tpu.vector_store %arg5[%c0_17, %c0_18], %25 {strides = array<i32>} : memref<16x128xf32, #tpu.memory_space<vmem>>, vector<16x128xf32>,
    } else {
    }
    return
  }
  func.func @transform_0(%arg0: i32, %arg1: i32) -> (i32, i32) {
    %c0_i32 = arith.constant 0 : i32
    %c0_i32_0 = arith.constant 0 : i32
    return %arg0, %c0_i32 : i32, i32
  }
  func.func @transform_1(%arg0: i32, %arg1: i32) -> (i32, i32, i32) {
    %c0_i32 = arith.constant 0 : i32
    %c0_i32_0 = arith.constant 0 : i32
    %c0_i32_1 = arith.constant 0 : i32
    return %arg1, %c0_i32, %c0_i32_0 : i32, i32, i32
  }
  func.func @transform_2(%arg0: i32, %arg1: i32) -> (i32, i32) {
    %c0_i32 = arith.constant 0 : i32
    %c0_i32_0 = arith.constant 0 : i32
    return %arg1, %c0_i32 : i32, i32
  }
  func.func @transform_3(%arg0: i32, %arg1: i32) -> (i32, i32) {
    %c0_i32 = arith.constant 0 : i32
    %c0_i32_0 = arith.constant 0 : i32
    return %arg0, %c0_i32 : i32, i32
  }
}

</mosaic_0001>

<bundles_post_ra>
// kernel: tpu_custom_call.1
= control target key start
LH: loop header
LB: loop body
LE: loop exit
PB: predicated region body
PF: predicated region fallthrough
CT: control target
= control target key end

     0   :  { %8 = vsyncpa [#allocation4], 0  ;;  %s1968_s0 = inlined_call_operand.hbm [shape: bf16[16,128], index: 0, kind: input, shape index: {}]   ;;  %s1969_s1 = inlined_call_operand.hbm [shape: bf16[1,128,1024], index: 1, kind: input, shape index: {}]   ;;  %s1970_s2 = inlined_call_operand.hbm [shape: bf16[512,128], index: 2, kind: input, shape index: {}]   ;;  %s1971_s3 = inlined_call_operand.hbm [shape: f32[16,128], index: 3, kind: output, shape index: {}]  }
   0x1   :  { %9 = vsyncpa [#allocation7], 0  ;;  %s28_s14 = sshll.u32 %s1969_s1, 4  ;;  %s29_s14 = int_to_ptr.hbm [resolvable:$true] %s28_s14 }
   0x2   :  { %10 = vsyncpa [#allocation5], 0  ;;  %s1726_s15 = smov [#allocation6]   ;;  %s15_s19 = sshll.u32 %s1968_s0, 4  ;;  %s16_s19 = int_to_ptr.hbm [resolvable:$true] %s15_s19 }
   0x3   :  { %s30_s16 = sshll.u32 %s1726_s15, 4  ;;  %s1727_s20 = smov 512   ;;  %s31_s16 = int_to_ptr.vmem [resolvable:$true] %s30_s16 }
   0x4   :  { %s1728_s21 = smov 32   ;;  %s1729_s22 = smov [#allocation3]  }
   0x5   :  { %36 = dma.hbm_to_vmem [thread:$0]  %s29_s14, 8192, %s31_s16, [#allocation7], %s1727_s20, %s1727_s20, %s1728_s21  }
   0x6   :  { %s17_s23 = sshll.u32 %s1729_s22, 4  ;;  %s1730_s24 = smov 64   ;;  %s18_s23 = int_to_ptr.vmem [resolvable:$true] %s17_s23 }
   0x7   :  { %s1731_s25 = smov 4   ;;  %s41_s27 = sshll.u32 %s1970_s2, 4  ;;  %s42_s27 = int_to_ptr.hbm [resolvable:$true] %s41_s27 }
   0x8   :  { %23 = dma.hbm_to_vmem [thread:$0]  %s16_s19, 128, %s18_s23, [#allocation4], %s1730_s24, %s1730_s24, %s1731_s25  }
   0x9   :  { %s1732_s28 = smov [#allocation8]  }
   0xa   :  { %s43_s29 = sshll.u32 %s1732_s28, 4  ;;  %s44_s29 = int_to_ptr.vmem [resolvable:$true] %s43_s29 }
   0xb   :  { %49 = dma.hbm_to_vmem [thread:$0]  %s42_s27, 4096, %s44_s29, [#allocation7], %s1730_s24, %s1730_s24, %s1731_s25  }
   0xc   :  { %1720 = dma.done.wait [#allocation4], 128  }
   0xd   :  { %1721 = vsyncadd [#allocation4], 4294967168 }
   0xe   :  { %1722 = dma.done.wait [#allocation7], 12288  }
   0xf   :  { %1723 = vsyncadd [#allocation7], 4294955008  ;;  %v1319_v0 = vld [vmem:[#allocation6 + $0x1c0] sm:$0xf]  ;;  %v1542_v2 = vld [vmem:[#allocation6 + $0x1c4] sm:$0xf] }
  0x10   :  { %v1546_v1 = vld [vmem:[#allocation6 + $0x1dc] sm:$0xf0]  ;;  %v1321_v4 = vld [vmem:[#allocation6 + $0x1e0] sm:$0xf0]  ;;  %v1327_v5 = vld [vmem:[#allocation6 + $0x1c8] sm:$0xf] }
  0x11   :  { %v1320_v3 = vor.u32 %v1546_v1, %v1319_v0  ;;  %v1547_v6 = vld [vmem:[#allocation6 + $0x1e4] sm:$0xf0]  ;;  %v1324_v7 = vor.u32 %v1542_v2, %v1321_v4  ;;  %v1543_v9 = vld [vmem:[#allocation6 + $0x1cc] sm:$0xf]  ;;  %v1287_v11 = vld [vmem:[#allocation6 + $0x180] sm:$0xf] }
  0x12   :  { %v1328_v8 = vor.u32 %v1547_v6, %v1327_v5  ;;  %v1329_v10 = vld [vmem:[#allocation6 + $0x1e8] sm:$0xf0]  ;;  %v1538_v13 = vld [vmem:[#allocation6 + $0x19c] sm:$0xf0]  ;;  %v1534_v14 = vld [vmem:[#allocation6 + $0x184] sm:$0xf] }
  0x13   :  { %460 = vmatpush.bf16.msra.mxu0 %v1320_v3  ;;  %v1332_v12 = vor.u32 %v1543_v9, %v1329_v10  ;;  %v1289_v15 = vld [vmem:[#allocation6 + $0x1a0] sm:$0xf0]  ;;  %474 = vmatpush.bf16.msra.mxu1 %v1324_v7  ;;  %v1288_v16 = vor.u32 %v1538_v13, %v1287_v11  ;;  %v1295_v18 = vld [vmem:[#allocation6 + $0x188] sm:$0xf]  ;;  %v1535_v20 = vld [vmem:[#allocation6 + $0x18c] sm:$0xf] }
  0x14   :  { %488 = vmatpush.bf16.msra.mxu2 %v1328_v8  ;;  %v1292_v17 = vor.u32 %v1534_v14, %v1289_v15  ;;  %v1539_v19 = vld [vmem:[#allocation6 + $0x1a4] sm:$0xf0]  ;;  %v1297_v22 = vld [vmem:[#allocation6 + $0x1a8] sm:$0xf0]  ;;  %v1255_v23 = vld [vmem:[#allocation6 + $0x140] sm:$0xf] }
  0x15   :  { %502 = vmatpush.bf16.msra.mxu3 %v1332_v12  ;;  %v1296_v21 = vor.u32 %v1539_v19, %v1295_v18  ;;  %v1530_v24 = vld [vmem:[#allocation6 + $0x15c] sm:$0xf0]  ;;  %v1300_v25 = vor.u32 %v1535_v20, %v1297_v22  ;;  %v1526_v26 = vld [vmem:[#allocation6 + $0x144] sm:$0xf]  ;;  %v1263_v28 = vld [vmem:[#allocation6 + $0x148] sm:$0xf] }
  0x16   :  { %v1257_v27 = vld [vmem:[#allocation6 + $0x160] sm:$0xf0]  ;;  %v1256_v29 = vor.u32 %v1530_v24, %v1255_v23  ;;  %v1531_v30 = vld [vmem:[#allocation6 + $0x164] sm:$0xf0]  ;;  %v1527_v31 = vld [vmem:[#allocation6 + $0x14c] sm:$0xf] }
  0x17   :  { %461 = vmatpush.bf16.msra.mxu0 %v1288_v16  ;;  %v1265_v32 = vld [vmem:[#allocation6 + $0x168] sm:$0xf0]  ;;  %475 = vmatpush.bf16.msra.mxu1 %v1292_v17  ;;  %v1260_v33 = vor.u32 %v1526_v26, %v1257_v27  ;;  %v1264_v34 = vor.u32 %v1531_v30, %v1263_v28  ;;  %v1223_v35 = vld [vmem:[#allocation6 + $0x100] sm:$0xf]  ;;  %v1518_v37 = vld [vmem:[#allocation6 + $0x104] sm:$0xf] }
  0x18   :  { %489 = vmatpush.bf16.msra.mxu2 %v1296_v21  ;;  %v1522_v36 = vld [vmem:[#allocation6 + $0x11c] sm:$0xf0]  ;;  %v1268_v38 = vor.u32 %v1527_v31, %v1265_v32  ;;  %v1225_v39 = vld [vmem:[#allocation6 + $0x120] sm:$0xf0]  ;;  %v1231_v40 = vld [vmem:[#allocation6 + $0x108] sm:$0xf] }
  0x19   :  { %503 = vmatpush.bf16.msra.mxu3 %v1300_v25  ;;  %v1523_v41 = vld [vmem:[#allocation6 + $0x124] sm:$0xf0]  ;;  %v1519_v42 = vld [vmem:[#allocation6 + $0x10c] sm:$0xf]  ;;  %v1224_v44 = vor.u32 %v1522_v36, %v1223_v35  ;;  %v1228_v45 = vor.u32 %v1518_v37, %v1225_v39  ;;  %v1191_v47 = vld [vmem:[#allocation6 + $0xc0] sm:$0xf] }
  0x1a   :  { %v1233_v43 = vld [vmem:[#allocation6 + $0x128] sm:$0xf0]  ;;  %v1232_v46 = vor.u32 %v1523_v41, %v1231_v40  ;;  %v1514_v48 = vld [vmem:[#allocation6 + $0xdc] sm:$0xf0]  ;;  %v1510_v49 = vld [vmem:[#allocation6 + $0xc4] sm:$0xf] }
  0x1b   :  { %462 = vmatpush.bf16.msra.mxu0 %v1256_v29  ;;  %476 = vmatpush.bf16.msra.mxu1 %v1260_v33  ;;  %v1236_v50 = vor.u32 %v1519_v42, %v1233_v43  ;;  %v1193_v51 = vld [vmem:[#allocation6 + $0xe0] sm:$0xf0]  ;;  %v1199_v52 = vld [vmem:[#allocation6 + $0xc8] sm:$0xf]  ;;  %v1511_v54 = vld [vmem:[#allocation6 + $0xcc] sm:$0xf]  ;;  %v1192_v56 = vor.u32 %v1514_v48, %v1191_v47 }
  0x1c   :  { %490 = vmatpush.bf16.msra.mxu2 %v1264_v34  ;;  %v1515_v53 = vld [vmem:[#allocation6 + $0xe4] sm:$0xf0]  ;;  %v1201_v55 = vld [vmem:[#allocation6 + $0xe8] sm:$0xf0]  ;;  %v1196_v57 = vor.u32 %v1510_v49, %v1193_v51  ;;  %v1159_v59 = vld [vmem:[#allocation6 + $0x80] sm:$0xf] }
  0x1d   :  { %504 = vmatpush.bf16.msra.mxu3 %v1268_v38  ;;  %v1200_v58 = vor.u32 %v1515_v53, %v1199_v52  ;;  %v1506_v60 = vld [vmem:[#allocation6 + $0x9c] sm:$0xf0]  ;;  %v1502_v61 = vld [vmem:[#allocation6 + $0x84] sm:$0xf]  ;;  %v1204_v62 = vor.u32 %v1511_v54, %v1201_v55  ;;  %v1167_v0 = vld [vmem:[#allocation6 + $0x88] sm:$0xf] }
  0x1e   :  { %v1161_v63 = vld [vmem:[#allocation6 + $0xa0] sm:$0xf0]  ;;  %v1507_v1 = vld [vmem:[#allocation6 + $0xa4] sm:$0xf0]  ;;  %v1503_v2 = vld [vmem:[#allocation6 + $0x8c] sm:$0xf]  ;;  %v1160_v4 = vor.u32 %v1506_v60, %v1159_v59 }
  0x1f   :  { %463 = vmatpush.bf16.msra.mxu0 %v1224_v44  ;;  %477 = vmatpush.bf16.msra.mxu1 %v1228_v45  ;;  %v1169_v3 = vld [vmem:[#allocation6 + $0xa8] sm:$0xf0]  ;;  %v1164_v5 = vor.u32 %v1502_v61, %v1161_v63  ;;  %v1168_v6 = vor.u32 %v1507_v1, %v1167_v0  ;;  %v1127_v7 = vld [vmem:[#allocation6 + $0x40] sm:$0xf]  ;;  %v1494_v9 = vld [vmem:[#allocation6 + $0x44] sm:$0xf] }
  0x20   :  { %491 = vmatpush.bf16.msra.mxu2 %v1232_v46  ;;  %v1498_v8 = vld [vmem:[#allocation6 + $0x5c] sm:$0xf0]  ;;  %v1172_v10 = vor.u32 %v1503_v2, %v1169_v3  ;;  %v1129_v11 = vld [vmem:[#allocation6 + $0x60] sm:$0xf0]  ;;  %v1135_v12 = vld [vmem:[#allocation6 + $0x48] sm:$0xf] }
  0x21   :  { %505 = vmatpush.bf16.msra.mxu3 %v1236_v50  ;;  %v1499_v13 = vld [vmem:[#allocation6 + $0x64] sm:$0xf0]  ;;  %v1495_v14 = vld [vmem:[#allocation6 + $0x4c] sm:$0xf]  ;;  %v1128_v16 = vor.u32 %v1498_v8, %v1127_v7  ;;  %v1095_v17 = vld [vmem:[#allocation6] sm:$0xf]  ;;  %v1132_v19 = vor.u32 %v1494_v9, %v1129_v11 }
  0x22   :  { %v1137_v15 = vld [vmem:[#allocation6 + $0x68] sm:$0xf0]  ;;  %v1490_v18 = vld [vmem:[#allocation6 + $0x1c] sm:$0xf0]  ;;  %v1136_v20 = vor.u32 %v1499_v13, %v1135_v12  ;;  %v1486_v21 = vld [vmem:[#allocation6 + $0x4] sm:$0xf] }
  0x23   :  { %464 = vmatpush.bf16.msra.mxu0 %v1192_v56  ;;  %478 = vmatpush.bf16.msra.mxu1 %v1196_v57  ;;  %v1097_v22 = vld [vmem:[#allocation6 + $0x20] sm:$0xf0]  ;;  %v1103_v23 = vld [vmem:[#allocation6 + $0x8] sm:$0xf]  ;;  %v1140_v24 = vor.u32 %v1495_v14, %v1137_v15  ;;  %v1487_v26 = vld [vmem:[#allocation6 + $0xc] sm:$0xf]  ;;  %v1096_v31 = vor.u32 %v1490_v18, %v1095_v17 }
  0x24   :  { %492 = vmatpush.bf16.msra.mxu2 %v1200_v58  ;;  %v1491_v25 = vld [vmem:[#allocation6 + $0x24] sm:$0xf0]  ;;  %v1105_v27 = vld [vmem:[#allocation6 + $0x28] sm:$0xf0]  ;;  %v1343_v28 = vld [vmem:[#allocation6 + $0x1d8] sm:$0xf]  ;;  %v1100_v35 = vor.u32 %v1486_v21, %v1097_v22 }
  0x25   :  { %506 = vmatpush.bf16.msra.mxu3 %v1204_v62  ;;  %v1549_v29 = vld [vmem:[#allocation6 + $0x1f4] sm:$0xf0]  ;;  %v1545_v30 = vld [vmem:[#allocation6 + $0x1dc] sm:$0xf]  ;;  %v1335_v33 = vld [vmem:[#allocation6 + $0x1d0] sm:$0xf]  ;;  %v1104_v36 = vor.u32 %v1491_v25, %v1103_v23  ;;  %v1108_v39 = vor.u32 %v1487_v26, %v1105_v27 }
  0x26   :  { %v1345_v32 = vld [vmem:[#allocation6 + $0x1f8] sm:$0xf0]  ;;  %v1548_v34 = vld [vmem:[#allocation6 + $0x1ec] sm:$0xf0]  ;;  %v1544_v37 = vld [vmem:[#allocation6 + $0x1d4] sm:$0xf]  ;;  %v1344_v40 = vor.u32 %v1549_v29, %v1343_v28 }
  0x27   :  { %465 = vmatpush.bf16.msra.mxu0 %v1160_v4  ;;  %479 = vmatpush.bf16.msra.mxu1 %v1164_v5  ;;  %v1337_v38 = vld [vmem:[#allocation6 + $0x1f0] sm:$0xf0]  ;;  %v1765_v41 = vld [vmem:[#allocation3] sm:$0xff]  ;;  %v1348_v42 = vor.u32 %v1545_v30, %v1345_v32  ;;  %v1336_v43 = vor.u32 %v1548_v34, %v1335_v33  ;;  %v1303_v49 = vld [vmem:[#allocation6 + $0x190] sm:$0xf]  ;;  %s1733_s0 = smov [#allocation9]  }
  0x28   :  { %493 = vmatpush.bf16.msra.mxu2 %v1168_v6  ;;  %v1311_v44 = vld [vmem:[#allocation6 + $0x198] sm:$0xf]  ;;  %v1537_v46 = vld [vmem:[#allocation6 + $0x19c] sm:$0xf]  ;;  %v1340_v47 = vor.u32 %v1544_v37, %v1337_v38  ;;  %v1540_v50 = vld [vmem:[#allocation6 + $0x1ac] sm:$0xf0] }
  0x29   :  { %507 = vmatpush.bf16.msra.mxu3 %v1172_v10  ;;  %v1541_v45 = vld [vmem:[#allocation6 + $0x1b4] sm:$0xf0]  ;;  %v1313_v48 = vld [vmem:[#allocation6 + $0x1b8] sm:$0xf0]  ;;  %v1536_v51 = vld [vmem:[#allocation6 + $0x194] sm:$0xf]  ;;  %v1304_v55 = vor.u32 %v1540_v50, %v1303_v49 }
  0x2a   :  { %v1305_v52 = vld [vmem:[#allocation6 + $0x1b0] sm:$0xf0]  ;;  %v1312_v53 = vor.u32 %v1541_v45, %v1311_v44  ;;  %v1316_v54 = vor.u32 %v1537_v46, %v1313_v48  ;;  %v1279_v56 = vld [vmem:[#allocation6 + $0x158] sm:$0xf]  ;;  %v1529_v58 = vld [vmem:[#allocation6 + $0x15c] sm:$0xf] }
  0x2b   :  { %466 = vmatpush.bf16.msra.mxu0 %v1128_v16  ;;  %480 = vmatpush.bf16.msra.mxu1 %v1132_v19  ;;  %v1533_v57 = vld [vmem:[#allocation6 + $0x174] sm:$0xf0]  ;;  %v1308_v59 = vor.u32 %v1536_v51, %v1305_v52  ;;  %v1281_v60 = vld [vmem:[#allocation6 + $0x178] sm:$0xf0]  ;;  %v1271_v61 = vld [vmem:[#allocation6 + $0x150] sm:$0xf] }
  0x2c   :  { %494 = vmatpush.bf16.msra.mxu2 %v1136_v20  ;;  %v1532_v62 = vld [vmem:[#allocation6 + $0x16c] sm:$0xf0]  ;;  %v1528_v63 = vld [vmem:[#allocation6 + $0x154] sm:$0xf]  ;;  %v1280_v1 = vor.u32 %v1533_v57, %v1279_v56  ;;  %v1284_v2 = vor.u32 %v1529_v58, %v1281_v60  ;;  %v1247_v4 = vld [vmem:[#allocation6 + $0x118] sm:$0xf] }
  0x2d   :  { %508 = vmatpush.bf16.msra.mxu3 %v1140_v24  ;;  %v1273_v0 = vld [vmem:[#allocation6 + $0x170] sm:$0xf0]  ;;  %v1272_v3 = vor.u32 %v1532_v62, %v1271_v61  ;;  %v1525_v5 = vld [vmem:[#allocation6 + $0x134] sm:$0xf0]  ;;  %v1521_v6 = vld [vmem:[#allocation6 + $0x11c] sm:$0xf] }
  0x2e   :  { %v1276_v7 = vor.u32 %v1528_v63, %v1273_v0  ;;  %v1249_v8 = vld [vmem:[#allocation6 + $0x138] sm:$0xf0]  ;;  %v1239_v9 = vld [vmem:[#allocation6 + $0x110] sm:$0xf]  ;;  %v1520_v11 = vld [vmem:[#allocation6 + $0x114] sm:$0xf]  ;;  %v1248_v13 = vor.u32 %v1525_v5, %v1247_v4 }
  0x2f   :  { %467 = vmatpush.bf16.msra.mxu0 %v1096_v31  ;;  %481 = vmatpush.bf16.msra.mxu1 %v1100_v35  ;;  %v1524_v10 = vld [vmem:[#allocation6 + $0x12c] sm:$0xf0]  ;;  %v1241_v12 = vld [vmem:[#allocation6 + $0x130] sm:$0xf0]  ;;  %v1252_v14 = vor.u32 %v1521_v6, %v1249_v8  ;;  %v1215_v16 = vld [vmem:[#allocation6 + $0xd8] sm:$0xf] }
  0x30   :  { %495 = vmatpush.bf16.msra.mxu2 %v1104_v36  ;;  %v1240_v15 = vor.u32 %v1524_v10, %v1239_v9  ;;  %v1517_v17 = vld [vmem:[#allocation6 + $0xf4] sm:$0xf0]  ;;  %v1513_v18 = vld [vmem:[#allocation6 + $0xdc] sm:$0xf]  ;;  %v1244_v19 = vor.u32 %v1520_v11, %v1241_v12  ;;  %v1207_v21 = vld [vmem:[#allocation6 + $0xd0] sm:$0xf] }
  0x31   :  { %509 = vmatpush.bf16.msra.mxu3 %v1108_v39  ;;  %v1217_v20 = vld [vmem:[#allocation6 + $0xf8] sm:$0xf0]  ;;  %v1516_v22 = vld [vmem:[#allocation6 + $0xec] sm:$0xf0]  ;;  %v1512_v23 = vld [vmem:[#allocation6 + $0xd4] sm:$0xf]  ;;  %v1216_v25 = vor.u32 %v1517_v17, %v1215_v16 }
  0x32   :  { %468 = vmatmul.bf16.vlgmr.msra.gmra.mxu0 %v1765_v41  ;;  %482 = vmatmul.bf16.vlgmr.msra.gmra.mxu1 %v1765_v41  ;;  %v1209_v24 = vld [vmem:[#allocation6 + $0xf0] sm:$0xf0]  ;;  %v1220_v26 = vor.u32 %v1513_v18, %v1217_v20  ;;  %v1208_v27 = vor.u32 %v1516_v22, %v1207_v21  ;;  %v1183_v28 = vld [vmem:[#allocation6 + $0x98] sm:$0xf]  ;;  %v1505_v30 = vld [vmem:[#allocation6 + $0x9c] sm:$0xf] }
  0x33   :  { %516 = vmatpush.bf16.msrb.mxu0 %v1336_v43  ;;  %530 = vmatpush.bf16.msrb.mxu1 %v1340_v47  ;;  %v1509_v29 = vld [vmem:[#allocation6 + $0xb4] sm:$0xf0]  ;;  %v1212_v31 = vor.u32 %v1512_v23, %v1209_v24  ;;  %v1185_v32 = vld [vmem:[#allocation6 + $0xb8] sm:$0xf0]  ;;  %v1175_v33 = vld [vmem:[#allocation6 + $0x90] sm:$0xf] }
  0x34   :  { %544 = vmatpush.bf16.msrb.mxu2 %v1344_v40  ;;  %510 = vmatmul.bf16.vlgmr.msra.gmra.mxu3 %v1765_v41  ;;  %v1508_v34 = vld [vmem:[#allocation6 + $0xac] sm:$0xf0]  ;;  %v1504_v35 = vld [vmem:[#allocation6 + $0x94] sm:$0xf]  ;;  %v1184_v37 = vor.u32 %v1509_v29, %v1183_v28  ;;  %v1188_v38 = vor.u32 %v1505_v30, %v1185_v32  ;;  %v1151_v40 = vld [vmem:[#allocation6 + $0x58] sm:$0xf] }
  0x35   :  { %558 = vmatpush.bf16.msrb.mxu3 %v1348_v42  ;;  %496 = vmatmul.bf16.vlgmr.msra.gmra.mxu2 %v1765_v41  ;;  %v1177_v36 = vld [vmem:[#allocation6 + $0xb0] sm:$0xf0]  ;;  %v1176_v39 = vor.u32 %v1508_v34, %v1175_v33  ;;  %v1501_v42 = vld [vmem:[#allocation6 + $0x74] sm:$0xf0]  ;;  %v1497_v43 = vld [vmem:[#allocation6 + $0x5c] sm:$0xf] }
  0x36   :  { %v1180_v44 = vor.u32 %v1504_v35, %v1177_v36  ;;  %v1153_v45 = vld [vmem:[#allocation6 + $0x78] sm:$0xf0]  ;;  %v1143_v46 = vld [vmem:[#allocation6 + $0x50] sm:$0xf]  ;;  %v1496_v48 = vld [vmem:[#allocation6 + $0x54] sm:$0xf]  ;;  %v1152_v50 = vor.u32 %v1501_v42, %v1151_v40 }
  0x37   :  { %517 = vmatpush.bf16.msrb.mxu0 %v1304_v55  ;;  %531 = vmatpush.bf16.msrb.mxu1 %v1308_v59  ;;  %v1500_v47 = vld [vmem:[#allocation6 + $0x6c] sm:$0xf0]  ;;  %v1145_v49 = vld [vmem:[#allocation6 + $0x70] sm:$0xf0]  ;;  %v1156_v51 = vor.u32 %v1497_v43, %v1153_v45  ;;  %v1489_v55 = vld [vmem:[#allocation6 + $0x1c] sm:$0xf] }
  0x38   :  { %545 = vmatpush.bf16.msrb.mxu2 %v1312_v53  ;;  %v1144_v52 = vor.u32 %v1500_v47, %v1143_v46  ;;  %v1119_v53 = vld [vmem:[#allocation6 + $0x18] sm:$0xf]  ;;  %v1148_v56 = vor.u32 %v1496_v48, %v1145_v49  ;;  %v1121_v57 = vld [vmem:[#allocation6 + $0x38] sm:$0xf0]  ;;  %v1111_v58 = vld [vmem:[#allocation6 + $0x10] sm:$0xf] }
  0x39   :  { %559 = vmatpush.bf16.msrb.mxu3 %v1316_v54  ;;  %v1493_v54 = vld [vmem:[#allocation6 + $0x34] sm:$0xf0]  ;;  %v1492_v59 = vld [vmem:[#allocation6 + $0x2c] sm:$0xf0]  ;;  %v1488_v60 = vld [vmem:[#allocation6 + $0x14] sm:$0xf]  ;;  %v1124_v63 = vor.u32 %v1489_v55, %v1121_v57 }
  0x3a   :  { %v1113_v61 = vld [vmem:[#allocation6 + $0x30] sm:$0xf0]  ;;  %v1120_v62 = vor.u32 %v1493_v54, %v1119_v53  ;;  %v1112_v0 = vor.u32 %v1492_v59, %v1111_v58  ;;  %v1573_v6 = vld [vmem:[#allocation8 + $0xb8] sm:$0xff]  ;;  %v1555_v8 = vld [vmem:[#allocation8 + $0x28] sm:$0xff]  ;;  %s1073_s2 = sshll.u32 %s1733_s0, 4  ;;  %s1075_s5 = sshll.u32 %s1971_s3, 4  ;;  %s1074_s2 = int_to_ptr.vmem [resolvable:$true] %s1073_s2  ;;  %s1076_s5 = int_to_ptr.hbm [resolvable:$true] %s1075_s5 }
  0x3b   :  { %518 = vmatpush.bf16.msrb.mxu0 %v1272_v3  ;;  %532 = vmatpush.bf16.msrb.mxu1 %v1276_v7  ;;  %v1565_v3 = vld [vmem:[#allocation8 + $0x78] sm:$0xff]  ;;  %v1556_v4 = vld [vmem:[#allocation8 + $0x30] sm:$0xff]  ;;  %v1563_v9 = vld [vmem:[#allocation8 + $0x68] sm:$0xff]  ;;  %s1734_s6 = smov 128   ;;  %s1735_s7 = smov 8  }
  0x3c   :  { %546 = vmatpush.bf16.msrb.mxu2 %v1280_v1  ;;  %v1116_v1 = vor.u32 %v1488_v60, %v1113_v61  ;;  %v1564_v5 = vld [vmem:[#allocation8 + $0x70] sm:$0xff]  ;;  %v1581_v7 = vld [vmem:[#allocation8 + $0xf8] sm:$0xff]  ;;  %v1562_v16 = vld [vmem:[#allocation8 + $0x60] sm:$0xff] }
  0x3d   :  { %560 = vmatpush.bf16.msrb.mxu3 %v1284_v2  ;;  %v1557_v2 = vld [vmem:[#allocation8 + $0x38] sm:$0xff]  ;;  %v1571_v17 = vld [vmem:[#allocation8 + $0xa8] sm:$0xff]  ;;  %v1570_v28 = vld [vmem:[#allocation8 + $0xa0] sm:$0xff] }
  0x3e   :  { %v1579_v18 = vld [vmem:[#allocation8 + $0xe8] sm:$0xff]  ;;  %v1553_v20 = vld [vmem:[#allocation8 + $0x18] sm:$0xff]  ;;  %v1578_v29 = vld [vmem:[#allocation8 + $0xe0] sm:$0xff] }
  0x3f   :  { %519 = vmatpush.bf16.msrb.mxu0 %v1240_v15  ;;  %533 = vmatpush.bf16.msrb.mxu1 %v1244_v19  ;;  %v1554_v15 = vld [vmem:[#allocation8 + $0x20] sm:$0xff]  ;;  %v1561_v21 = vld [vmem:[#allocation8 + $0x58] sm:$0xff]  ;;  %v1552_v35 = vld [vmem:[#allocation8 + $0x10] sm:$0xff] }
  0x40   :  { %547 = vmatpush.bf16.msrb.mxu2 %v1248_v13  ;;  %v1580_v13 = vld [vmem:[#allocation8 + $0xf0] sm:$0xff]  ;;  %v1551_v40 = vld [vmem:[#allocation8 + $0x8] sm:$0xff]  ;;  %v1550_v54 = vld [vmem:[#allocation8] sm:$0xff] }
  0x41   :  { %561 = vmatpush.bf16.msrb.mxu3 %v1252_v14  ;;  %v1560_v36 = vld [vmem:[#allocation8 + $0x50] sm:$0xff]  ;;  %v1559_v42 = vld [vmem:[#allocation8 + $0x48] sm:$0xff]  ;;  %v1558_v55 = vld [vmem:[#allocation8 + $0x40] sm:$0xff] }
  0x42   :  { %v1568_v47 = vld [vmem:[#allocation8 + $0x90] sm:$0xff]  ;;  %v1567_v61 = vld [vmem:[#allocation8 + $0x88] sm:$0xff] }
  0x43   :  { %520 = vmatpush.bf16.msrb.mxu0 %v1208_v27  ;;  %534 = vmatpush.bf16.msrb.mxu1 %v1212_v31  ;;  %v1576_v48 = vld [vmem:[#allocation8 + $0xd0] sm:$0xff] }
  0x44   :  { %548 = vmatpush.bf16.msrb.mxu2 %v1216_v25 }
  0x45   :  { %562 = vmatpush.bf16.msrb.mxu3 %v1220_v26 }
  0x47   :  { %521 = vmatpush.bf16.msrb.mxu0 %v1176_v39  ;;  %535 = vmatpush.bf16.msrb.mxu1 %v1180_v44 }
  0x48   :  { %549 = vmatpush.bf16.msrb.mxu2 %v1184_v37  ;;  %v1569_v37 = vld [vmem:[#allocation8 + $0x98] sm:$0xff] }
  0x49   :  { %563 = vmatpush.bf16.msrb.mxu3 %v1188_v38  ;;  %v1577_v38 = vld [vmem:[#allocation8 + $0xd8] sm:$0xff] }
  0x4b   :  { %522 = vmatpush.bf16.msrb.mxu0 %v1144_v52  ;;  %536 = vmatpush.bf16.msrb.mxu1 %v1148_v56 }
  0x4c   :  { %550 = vmatpush.bf16.msrb.mxu2 %v1152_v50 }
  0x4d   :  { %564 = vmatpush.bf16.msrb.mxu3 %v1156_v51 }
  0x4f   :  { %523 = vmatpush.bf16.msrb.mxu0 %v1112_v0  ;;  %537 = vmatpush.bf16.msrb.mxu1 %v1116_v1 }
  0x50   :  { %551 = vmatpush.bf16.msrb.mxu2 %v1120_v62  ;;  %v1575_v62 = vld [vmem:[#allocation8 + $0xc8] sm:$0xff] }
  0x51   :  { %565 = vmatpush.bf16.msrb.mxu3 %v1124_v63 }
  0x52   :  { %524 = vmatmul.bf16.vlgmr.msrb.gmra.mxu0 %v1765_v41  ;;  %538 = vmatmul.bf16.vlgmr.msrb.gmra.mxu1 %v1765_v41 }
  0x53   :  { %552 = vmatmul.bf16.vlgmr.msrb.gmra.mxu2 %v1765_v41  ;;  %1002 = vmatpush.bf16.msra.mxu0 %v1557_v2 }
  0x54   :  { %566 = vmatmul.bf16.vlgmr.msrb.gmra.mxu3 %v1765_v41  ;;  %1016 = vmatpush.bf16.msra.mxu1 %v1565_v3  ;;  %v1572_v41 = vld [vmem:[#allocation8 + $0xb0] sm:$0xff] }
  0x55   :  { %1030 = vmatpush.bf16.msra.mxu2 %v1573_v6  ;;  %1044 = vmatpush.bf16.msra.mxu3 %v1581_v7 }
  0x57   :  { %1003 = vmatpush.bf16.msra.mxu0 %v1556_v4 }
  0x58   :  { %1017 = vmatpush.bf16.msra.mxu1 %v1564_v5 }
  0x59   :  { %1031 = vmatpush.bf16.msra.mxu2 %v1572_v41  ;;  %1045 = vmatpush.bf16.msra.mxu3 %v1580_v13 }
  0x5b   :  { %1004 = vmatpush.bf16.msra.mxu0 %v1555_v8  ;;  %v1566_v8 = vld [vmem:[#allocation8 + $0x80] sm:$0xff] }
  0x5c   :  { %1018 = vmatpush.bf16.msra.mxu1 %v1563_v9  ;;  %v1574_v9 = vld [vmem:[#allocation8 + $0xc0] sm:$0xff] }
  0x5d   :  { %1032 = vmatpush.bf16.msra.mxu2 %v1571_v17  ;;  %1046 = vmatpush.bf16.msra.mxu3 %v1579_v18 }
  0x5f   :  { %1005 = vmatpush.bf16.msra.mxu0 %v1554_v15 }
  0x60   :  { %1019 = vmatpush.bf16.msra.mxu1 %v1562_v16 }
  0x61   :  { %1033 = vmatpush.bf16.msra.mxu2 %v1570_v28  ;;  %1047 = vmatpush.bf16.msra.mxu3 %v1578_v29 }
  0x63   :  { %1006 = vmatpush.bf16.msra.mxu0 %v1553_v20 }
  0x64   :  { %1020 = vmatpush.bf16.msra.mxu1 %v1561_v21 }
  0x65   :  { %1034 = vmatpush.bf16.msra.mxu2 %v1569_v37  ;;  %1048 = vmatpush.bf16.msra.mxu3 %v1577_v38 }
  0x67   :  { %1007 = vmatpush.bf16.msra.mxu0 %v1552_v35 }
  0x68   :  { %1021 = vmatpush.bf16.msra.mxu1 %v1560_v36 }
  0x69   :  { %1035 = vmatpush.bf16.msra.mxu2 %v1568_v47  ;;  %1049 = vmatpush.bf16.msra.mxu3 %v1576_v48 }
  0x6b   :  { %1008 = vmatpush.bf16.msra.mxu0 %v1551_v40 }
  0x6c   :  { %1022 = vmatpush.bf16.msra.mxu1 %v1559_v42 }
  0x6d   :  { %1036 = vmatpush.bf16.msra.mxu2 %v1567_v61  ;;  %1050 = vmatpush.bf16.msra.mxu3 %v1575_v62 }
  0x6f   :  { %1009 = vmatpush.bf16.msra.mxu0 %v1550_v54 }
  0x70   :  { %1023 = vmatpush.bf16.msra.mxu1 %v1558_v55 }
  0x71   :  { %1037 = vmatpush.bf16.msra.mxu2 %v1566_v8  ;;  %1051 = vmatpush.bf16.msra.mxu3 %v1574_v9 }
  0xaf   :  { %v1775_v10 = vpop.f32.mrf.mxu0  ;;  %v1778_v12 = vpop.f32.mrf.mxu1 }
  0xb0   :  { %v1349_v11 = vmul.f32 -1.442695, %v1775_v10  ;;  %v1350_v14 = vmul.f32 -1.442695, %v1778_v12 }
  0xb2   :  { %1592 = vpow2.f32 %v1349_v11 }
  0xb3   :  { %1594 = vpow2.f32 %v1350_v14 }
  0xb7   :  { %v1784_v23 = vpop.f32.mrf.mxu3  ;;  %v1786_v24 = vpop.f32.mrf.mxu0 }
  0xb8   :  { %v1781_v19 = vpop.f32.mrf.mxu2  ;;  %v1593_v25 = vpop.eup %1592  ;;  %v1352_v26 = vmul.f32 -1.442695, %v1784_v23  ;;  %v1353_v32 = vmul.f32 -1.442695, %v1786_v24 }
  0xb9   :  { %v1351_v22 = vmul.f32 -1.442695, %v1781_v19  ;;  %v1789_v27 = vpop.f32.mrf.mxu1  ;;  %v1595_v30 = vpop.eup %1594  ;;  %v1791_v31 = vadd.f32 1.0, %v1593_v25 }
  0xba   :  { %v1794_v33 = vadd.f32 1.0, %v1595_v30  ;;  %v1354_v34 = vmul.f32 -1.442695, %v1789_v27 }
  0xbb   :  { %1596 = vpow2.f32 %v1351_v22  ;;  %vm609_vm0 = vweird.f32 %v1791_v31  ;;  %v613_v3 = vand.u32 2147483647, %v1791_v31  ;;  %v615_v6 = vand.u32 2147483648, %v1791_v31 }
  0xbc   :  { %1598 = vpow2.f32 %v1352_v26  ;;  %vm624_vm1 = vweird.f32 %v1794_v33  ;;  %v628_v7 = vand.u32 2147483647, %v1794_v33  ;;  %v630_v11 = vand.u32 2147483648, %v1794_v33 }
  0xbd   :  { %1600 = vrcp.f32 %v1791_v31  ;;  %vm1848_vm4 = vcmp.eq.f32.partialorder %v613_v3, 8.507059e+37  ;;  %v616_v26 = vor.u32 1.1754944e-38, %v615_v6 }
  0xbe   :  { %1602 = vrcp.f32 %v1794_v33  ;;  %vm1852_vm5 = vcmp.eq.f32.partialorder %v628_v7, 8.507059e+37 }
  0xbf   :  { %1604 = vpow2.f32 %v1353_v32  ;;  %v1803_v46 = vpop.f32.mrf.mxu3  ;;  %v631_v32 = vor.u32 1.1754944e-38, %v630_v11 }
  0xc0   :  { %1606 = vpow2.f32 %v1354_v34  ;;  %v1799_v39 = vpop.f32.mrf.mxu2  ;;  %v1356_v58 = vmul.f32 -1.442695, %v1803_v46 }
  0xc1   :  { %v1597_v43 = vpop.eup %1596  ;;  %v1355_v51 = vmul.f32 -1.442695, %v1799_v39 }
  0xc2   :  { %v1599_v44 = vpop.eup %1598  ;;  %v1801_v45 = vadd.f32 1.0, %v1597_v43 }
  0xc3   :  { %v1805_v49 = vpop.eup %1600  ;;  %v1807_v50 = vadd.f32 1.0, %v1599_v44 }
  0xc4   :  { %v1810_v52 = vpop.eup %1602  ;;  %v605_v53 = vmul.f32 %v1805_v49, %v1791_v31  ;;  %1608 = vrcp.f32 %v1801_v45  ;;  %vm610_vm2 = vweird.f32 %v1805_v49  ;;  %v643_v14 = vand.u32 2147483647, %v1801_v45 }
  0xc5   :  { %v1605_v56 = vpop.eup %1604  ;;  %v620_v57 = vmul.f32 %v1810_v52, %v1794_v33  ;;  %1610 = vrcp.f32 %v1807_v50  ;;  %vm625_vm3 = vweird.f32 %v1810_v52  ;;  %v645_v15 = vand.u32 2147483648, %v1801_v45  ;;  %vm1860_vm6 = vmor %vm609_vm0, %vm610_vm2 }
  0xc6   :  { %v1607_v59 = vpop.eup %1606  ;;  %v606_v60 = vsub.f32 1.0, %v605_v53  ;;  %1612 = vpow2.f32 %v1355_v51  ;;  %v1820_v0 = vadd.f32 1.0, %v1605_v56  ;;  %v660_v16 = vand.u32 2147483648, %v1807_v50  ;;  %vm1870_vm8 = vmor %vm624_vm1, %vm625_vm3 }
  0xc7   :  { %v621_v63 = vsub.f32 1.0, %v620_v57  ;;  %v1822_v1 = vadd.f32 1.0, %v1607_v59  ;;  %1614 = vpow2.f32 %v1356_v58  ;;  %vm639_vm7 = vweird.f32 %v1801_v45 }
  0xc8   :  { %v607_v2 = vmul.f32 %v1805_v49, %v606_v60  ;;  %1616 = vrcp.f32 %v1820_v0  ;;  %v646_v31 = vor.u32 1.1754944e-38, %v645_v15  ;;  %vm654_vm9 = vweird.f32 %v1807_v50 }
  0xc9   :  { %v622_v4 = vmul.f32 %v1810_v52, %v621_v63  ;;  %1618 = vrcp.f32 %v1822_v1  ;;  %v658_v38 = vand.u32 2147483647, %v1807_v50  ;;  %v673_v40 = vand.u32 2147483647, %v1820_v0 }
  0xca   :  { %v1827_v5 = vpop.eup %1608  ;;  %v608_v18 = vadd.f32 %v1805_v49, %v607_v2  ;;  %vm1885_vm10 = vcmp.eq.f32.partialorder %v643_v14, 8.507059e+37  ;;  %v1889_v47 = vor.u32 1.1754944e-38, %v660_v16  ;;  %vm669_vm12 = vweird.f32 %v1820_v0 }
  0xcb   :  { %v635_v41 = vmul.f32 %v1827_v5, %v1801_v45  ;;  %v1838_v13 = vpop.eup %1610  ;;  %v623_v20 = vadd.f32 %v1810_v52, %v622_v4  ;;  %vm640_vm11 = vweird.f32 %v1827_v5  ;;  %vm1904_vm13 = vcmp.eq.f32.partialorder %v673_v40, 8.507059e+37 }
  0xcc   :  { %v1613_v17 = vpop.eup %1612  ;;  %v650_v22 = vmul.f32 %v1838_v13, %v1807_v50  ;;  %v612_v43 = vsel %vm1860_vm6, %v1805_v49, %v608_v18  ;;  %v675_v61 = vand.u32 2147483648, %v1820_v0  ;;  %vm1911_vm14 = vmor %vm639_vm7, %vm640_vm11  ;;  %vm1915_vm15 = vcmp.eq.f32.partialorder %v658_v38, 8.507059e+37 }
  0xcd   :  { %v636_v21 = vsub.f32 1.0, %v635_v41  ;;  %v1615_v29 = vpop.eup %1614  ;;  %v1877_v42 = vadd.f32 1.0, %v1613_v17  ;;  %v627_v33 = vsel %vm1870_vm8, %v1810_v52, %v623_v20  ;;  %v617_v58 = vsel %vm1848_vm4, %v616_v26, %v612_v43 }
  0xce   :  { %v651_v35 = vsub.f32 1.0, %v650_v22  ;;  %v1617_v36 = vpop.eup %1616  ;;  %v1895_v49 = vadd.f32 1.0, %v1615_v29  ;;  %v632_v59 = vsel %vm1852_vm5, %v631_v32, %v627_v33  ;;  %v688_v4 = vand.u32 2147483647, %v1822_v1 }
  0xcf   :  { %v637_v34 = vmul.f32 %v1827_v5, %v636_v21  ;;  %v665_v48 = vmul.f32 %v1617_v36, %v1820_v0  ;;  %v525_v51 = vpop.f32.mrf.mxu0  ;;  %v1619_v53 = vpop.eup %1618  ;;  %1620 = vrcp.f32 %v1877_v42  ;;  %vm670_vm0 = vweird.f32 %v1617_v36 }
  0xd0   :  { %v539_v55 = vpop.f32.mrf.mxu1  ;;  %v652_v52 = vmul.f32 %v1838_v13, %v651_v35  ;;  %v680_v57 = vmul.f32 %v1619_v53, %v1822_v1  ;;  %vm655_vm1 = vweird.f32 %v1838_v13  ;;  %v690_v45 = vand.u32 2147483648, %v1822_v1  ;;  %vm671_vm3 = vmor %vm669_vm12, %vm670_vm0 }
  0xd1   :  { %v638_v54 = vadd.f32 %v1827_v5, %v637_v34  ;;  %v666_v56 = vsub.f32 1.0, %v665_v48  ;;  %1622 = vrcp.f32 %v1895_v49  ;;  %vm685_vm2 = vweird.f32 %v1619_v53  ;;  %vm1934_vm5 = vmor %vm654_vm9, %vm655_vm1 }
  0xd2   :  { %v681_v3 = vsub.f32 1.0, %v680_v57  ;;  %v653_v7 = vadd.f32 %v1838_v13, %v652_v52  ;;  %v724_v41 = vmul.f32 %v617_v58, %v1775_v10  ;;  %v725_v14 = vmul.f32 %v632_v59, %v1778_v12 }
  0xd3   :  { %v667_v2 = vmul.f32 %v1617_v36, %v666_v56  ;;  %v642_v6 = vsel %vm1911_vm14, %v1827_v5, %v638_v54  ;;  %v676_v5 = vor.u32 1.1754944e-38, %v675_v61  ;;  %vm684_vm4 = vweird.f32 %v1822_v1 }
  0xd4   :  { %v682_v9 = vmul.f32 %v1619_v53, %v681_v3  ;;  %vm689_vm6 = vcmp.eq.f32.partialorder %v688_v4, 8.507059e+37  ;;  %v647_v12 = vsel %vm1885_vm10, %v646_v31, %v642_v6  ;;  %vm686_vm7 = vmor %vm684_vm4, %vm685_vm2  ;;  %v691_v1 = vor.u32 1.1754944e-38, %v690_v45 }
  0xd5   :  { %v668_v8 = vadd.f32 %v1617_v36, %v667_v2  ;;  %v1621_v11 = vpop.eup %1620  ;;  %v703_v50 = vand.u32 2147483647, %v1877_v42  ;;  %v657_v20 = vsel %vm1934_vm5, %v1838_v13, %v653_v7  ;;  %vm699_vm8 = vweird.f32 %v1877_v42 }
  0xd6   :  { %v553_v15 = vpop.f32.mrf.mxu2  ;;  %v683_v18 = vadd.f32 %v1619_v53, %v682_v9  ;;  %v695_v10 = vmul.f32 %v1621_v11, %v1877_v42  ;;  %v705_v30 = vand.u32 2147483648, %v1877_v42  ;;  %v732_v32 = vmul.f32 %v724_v41, %v525_v51 }
  0xd7   :  { %v672_v17 = vsel %vm671_vm3, %v1617_v36, %v668_v8  ;;  %v527_v26 = vpop.f32.mrf.mxu0  ;;  %v1623_v28 = vpop.eup %1622  ;;  %vm700_vm9 = vweird.f32 %v1621_v11  ;;  %v662_v31 = vsel %vm1915_vm15, %v1889_v47, %v657_v20  ;;  %vm704_vm10 = vcmp.eq.f32.partialorder %v703_v50, 8.507059e+37 }
  0xd8   :  { %v677_v0 = vsel %vm1904_vm13, %v676_v5, %v672_v17  ;;  %v687_v22 = vsel %vm686_vm7, %v1619_v53, %v683_v18  ;;  %v696_v25 = vsub.f32 1.0, %v695_v10  ;;  %v567_v34 = vpop.f32.mrf.mxu3  ;;  %v541_v35 = vpop.f32.mrf.mxu1  ;;  %v710_v13 = vmul.f32 %v1623_v28, %v1895_v49  ;;  %vm701_vm11 = vmor %vm699_vm8, %vm700_vm9 }
  0xd9   :  { %v728_v21 = vmul.f32 %v677_v0, %v1786_v24  ;;  %v692_v29 = vsel %vm689_vm6, %v691_v1, %v687_v22  ;;  %v726_v24 = vmul.f32 %v647_v12, %v1781_v19  ;;  %v733_v33 = vmul.f32 %v725_v14, %v539_v55 }
  0xda   :  { %v729_v36 = vmul.f32 %v692_v29, %v1789_v27  ;;  %v697_v37 = vmul.f32 %v1621_v11, %v696_v25  ;;  %v711_v43 = vsub.f32 1.0, %v710_v13  ;;  %v706_v27 = vor.u32 1.1754944e-38, %v705_v30 }
  0xdb   :  { %v736_v38 = vmul.f32 %v728_v21, %v527_v26  ;;  %v718_v48 = vand.u32 2147483647, %v1895_v49  ;;  %v720_v51 = vand.u32 2147483648, %v1895_v49  ;;  %vm715_vm12 = vweird.f32 %v1623_v28 }
  0xdc   :  { %v698_v40 = vadd.f32 %v1621_v11, %v697_v37  ;;  %v737_v44 = vmul.f32 %v729_v36, %v541_v35  ;;  %v712_v54 = vmul.f32 %v1623_v28, %v711_v43  ;;  %vm714_vm13 = vweird.f32 %v1895_v49 }
  0xdd   :  { %v742_v53 = vpack.c.bf16 %v736_v38, %v732_v32  ;;  %v727_v42 = vmul.f32 %v662_v31, %v1784_v23  ;;  %vm716_vm14 = vmor %vm714_vm13, %vm715_vm12  ;;  %v721_v58 = vor.u32 1.1754944e-38, %v720_v51  ;;  %vm719_vm15 = vcmp.eq.f32.partialorder %v718_v48, 8.507059e+37 }
  0xde   :  { %v702_v19 = vsel %vm701_vm11, %v1621_v11, %v698_v40  ;;  %v743_v52 = vpack.c.bf16 %v737_v44, %v733_v33  ;;  %v555_v56 = vpop.f32.mrf.mxu2  ;;  %v713_v55 = vadd.f32 %v1623_v28, %v712_v54  ;;  %v734_v60 = vmul.f32 %v726_v24, %v553_v15 }
  0xdf   :  { %v707_v47 = vsel %vm704_vm10, %v706_v27, %v702_v19  ;;  %1010 = vmatmul.bf16.vlgmr.msra.gmra.mxu0 %v742_v53  ;;  %v735_v4 = vmul.f32 %v727_v42, %v567_v34 }
  0xe0   :  { %v730_v57 = vmul.f32 %v707_v47, %v1799_v39  ;;  %1024 = vmatmul.bf16.vlgmr.msra.gmra.mxu1 %v743_v52  ;;  %v717_v59 = vsel %vm716_vm14, %v1623_v28, %v713_v55  ;;  %v569_v63 = vpop.f32.mrf.mxu3 }
  0xe1   :  { %v722_v62 = vsel %vm719_vm15, %v721_v58, %v717_v59 }
  0xe2   :  { %v738_v61 = vmul.f32 %v730_v57, %v555_v56  ;;  %v731_v2 = vmul.f32 %v722_v62, %v1803_v46 }
  0xe4   :  { %v744_v3 = vpack.c.bf16 %v738_v61, %v734_v60  ;;  %v739_v6 = vmul.f32 %v731_v2, %v569_v63 }
  0xe6   :  { %1038 = vmatmul.bf16.vlgmr.msra.gmra.mxu2 %v744_v3  ;;  %v745_v39 = vpack.c.bf16 %v739_v6, %v735_v4 }
  0xe8   :  { %1052 = vmatmul.bf16.vlgmr.msra.gmra.mxu3 %v745_v39 }
 0x15c   :  { %v1011_v49 = vpop.f32.mrf.mxu0 }
 0x15d   :  { %v1025_v45 = vpop.f32.mrf.mxu1 }
 0x15e   :  { %v1026_v7 = vadd.f32 %v1025_v45, %v1011_v49 }
 0x164   :  { %v1013_v9 = vpop.f32.mrf.mxu0 }
 0x165   :  { %v1027_v11 = vpop.f32.mrf.mxu1 }
 0x166   :  { %v1028_v5 = vadd.f32 %v1027_v11, %v1013_v9 }
 0x169   :  { %v1039_v23 = vpop.f32.mrf.mxu2 }
 0x16a   :  { %v1040_v8 = vadd.f32 %v1039_v23, %v1026_v7 }
 0x16b   :  { %v1053_v41 = vpop.f32.mrf.mxu3 }
 0x16c   :  { %v1054_v14 = vadd.f32 %v1053_v41, %v1040_v8 }
 0x16e   :  { %1067 = vst [vmem:[#allocation9] sm:$0xff] %v1054_v14 }
 0x171   :  { %v1041_v15 = vpop.f32.mrf.mxu2 }
 0x172   :  { %v1042_v16 = vadd.f32 %v1041_v15, %v1028_v5 }
 0x173   :  { %v1055_v46 = vpop.f32.mrf.mxu3 }
 0x174   :  { %v1056_v17 = vadd.f32 %v1055_v46, %v1042_v16 }
 0x176   :  { %1068 = vst [vmem:[#allocation9 + $0x8] sm:$0xff] %v1056_v17 }
 0x177   :  { %1081 = dma.vmem_to_hbm [thread:$0]  %s1074_s2, 256, %s1076_s5, [#allocation5], %s1734_s6, %s1734_s6, %s1735_s7  }
 0x178   :  { %1724 = dma.done.wait [#allocation5], 256  }
 0x179   :  { %1725 = vsyncadd [#allocation5], 4294967040 }
 0x17a   :  { %1086 = vsyncpa [#allocation4], 1 }
 0x17b   :  { %1087 = vsyncpa [#allocation7], 1 }
 0x17c   :  { %1088 = vsyncpa [#allocation5], 1 }

</bundles_post_ra>
